<compile_context>
chip_gen: v5e
topology: v5e:2x2
jax: 0.10.0
libtpu: 0.0.40
codegen_flags: <defaults>
</compile_context>

<pallas_src>
import jax
import jax.numpy as jnp
from jax import lax
from jax.experimental import pallas as pl
from jax.experimental.pallas import tpu as pltpu

_VMEM_LIMIT = 32 * 1024 * 1024  # explicit scoped-VMEM limit, safe on v5e/v6e/v7x


def _round_up(n, m):
    return (n + m - 1) // m * m


# ----------------------------------------------------------------------------- kernels
def _mm_bias_relu_kernel(x_ref, w_ref, b_ref, o_ref):
    """o = relu(x @ w + b); bf16 MXU inputs, f32 accumulate + bias/ReLU (v5e-friendly)."""
    acc = jnp.dot(x_ref[...], w_ref[...], preferred_element_type=jnp.float32)
    o_ref[...] = jnp.maximum(acc + b_ref[...], 0.0).astype(o_ref.dtype)


def _duel_head_kernel(f_ref, w1_ref, b1_ref, w2_ref, b2_ref, o_ref, *,
                      n_actions, batch):
    """Fused dueling head.

    w1 = [Wv1 | Wa1]                       (F, 1024)  -> one full-width MXU matmul
    w2 = block-diag(Wv2 -> lane 0, Wa2 -> lanes 1..A), zero-padded to 128 lanes.
    Output lanes 1..A hold Q = V + A - mean(A) (global mean, like torch .mean()).
    """
    f = f_ref[...].astype(jnp.bfloat16)
    h = jnp.dot(f, w1_ref[...], preferred_element_type=jnp.float32) + b1_ref[...]
    h = jnp.maximum(h, 0.0)                                           # f32 elementwise
    full = jnp.dot(h.astype(jnp.bfloat16), w2_ref[...],
                   preferred_element_type=jnp.float32) + b2_ref[...]  # (B, 128)

    lane = lax.broadcasted_iota(jnp.int32, full.shape, dimension=1)
    a_mask = (lane >= 1) & (lane <= n_actions)
    mean_a = jnp.sum(jnp.where(a_mask, full, 0.0)) * (1.0 / float(batch * n_actions))
    v = jnp.sum(jnp.where(lane == 0, full, 0.0), axis=1, keepdims=True)   # (B, 1)
    o_ref[...] = v + full - mean_a          # lane-dense store; wrapper slices lanes 1..A


# ----------------------------------------------------------------------------- wrappers
def _matmul_bias_relu(x, w, b):
    """relu(x @ w + b) via Pallas.  x: (M, K) bf16; w: (K_pad, 128) bf16; b: (1, 128) f32."""
    M, K = x.shape
    Kp, Np = w.shape

    # Row tiling (review): these matmuls are HBM/overhead-bound, so use big tiles.
    #  - small M: one full block;
    #  - large M: 1024-2048-row tiles with >= 2 tiles so the "parallel" grid axis can
    #    be sharded over v7x's two TensorCores (rounded to 128 rows to bound padding waste).
    if M <= 1024:
        TM = _round_up(M, 16)
    else:
        ntiles = max(2, pl.cdiv(M, 2048))
        TM = _round_up(pl.cdiv(M, ntiles), 128)
    Mp = _round_up(M, TM)

    x = x.astype(jnp.bfloat16)
    if (Mp, Kp) != (M, K):                       # single fused pad (rows + contraction dim)
        x = jnp.pad(x, ((0, Mp - M), (0, Kp - K)))

    out = pl.pallas_call(
        _mm_bias_relu_kernel,
        out_shape=jax.ShapeDtypeStruct((Mp, Np), jnp.bfloat16),
        grid=(Mp // TM,),
        in_specs=[
            pl.BlockSpec((TM, Kp), lambda i: (i, 0)),
            pl.BlockSpec((Kp, Np), lambda i: (0, 0)),   # weights: constant -> VMEM-resident
            pl.BlockSpec((1, Np), lambda i: (0, 0)),
        ],
        out_specs=pl.BlockSpec((TM, Np), lambda i: (i, 0)),
        compiler_params=pltpu.CompilerParams(
            dimension_semantics=("parallel",),
            vmem_limit_bytes=_VMEM_LIMIT),
    )(x, w, b)
    return out


def _im2col(x, k, s, c_take=None):
    """x: (B, H, W, C) NHWC -> patches (B*OH*OW, k*k*c_take), feature order (kh, kw, c).

    c_take < C fuses the channel-unpad slice into the same strided lax.slice calls
    (no separate full-array channel-slice copy between conv stages).
    """
    B, H, W, C = x.shape
    if c_take is None:
        c_take = C
    OH = (H - k) // s + 1
    OW = (W - k) // s + 1
    cols = []
    for i in range(k):
        for j in range(k):
            cols.append(lax.slice(
                x, (0, i, j, 0),
                (B, i + s * (OH - 1) + 1, j + s * (OW - 1) + 1, c_take),
                (1, s, s, 1)))
    patches = jnp.concatenate(cols, axis=-1)           # (B, OH, OW, k*k*c_take)
    return patches.reshape(B * OH * OW, k * k * c_take), OH, OW


def duel_q_cnn_forward(x_nchw, kp):
    """x_nchw: (B, C, H, W) raw pixel values (0..255), like the PyTorch module's input."""
    B = x_nchw.shape[0]
    A = kp["n_actions"]
    assert A <= 127, "dueling head packs V into lane 0 and A into lanes 1..A (needs A <= 127)"
    # NHWC (lane = channels); raw pixels cast to bf16 (0..255 integers exact; the /255
    # scale is folded into wc1 in prepare_params).
    x = jnp.transpose(x_nchw, (0, 2, 3, 1)).astype(jnp.bfloat16)

    # conv1: 8x8 stride 4
    p, oh, ow = _im2col(x, 8, 4)
    h = _matmul_bias_relu(p, kp["wc1"], kp["bc1"])
    h = h[:B * oh * ow].reshape(B, oh, ow, 128)        # keep padded 128 ch (zeros beyond 32)
    # conv2: 4x4 stride 2 (channel slice fused into im2col)
    p, oh, ow = _im2col(h, 4, 2, c_take=32)
    h = _matmul_bias_relu(p, kp["wc2"], kp["bc2"])
    h = h[:B * oh * ow].reshape(B, oh, ow, 128)
    # conv3: 3x3 stride 1
    p, oh, ow = _im2col(h, 3, 1, c_take=64)
    h = _matmul_bias_relu(p, kp["wc3"], kp["bc3"])
    feats = h[:B * oh * ow, :64].reshape(B, oh * ow * 64)   # (B, F), NHWC flatten

    # fused dueling head (single kernel; global mean forbids batch tiling here)
    out = pl.pallas_call(
        lambda f, w1, b1, w2, b2, o: _duel_head_kernel(
            f, w1, b1, w2, b2, o, n_actions=A, batch=B),
        out_shape=jax.ShapeDtypeStruct((B, 128), jnp.float32),
        in_specs=[pl.BlockSpec(memory_space=pltpu.MemorySpace.VMEM)] * 5,
        out_specs=pl.BlockSpec(memory_space=pltpu.MemorySpace.VMEM),
        compiler_params=pltpu.CompilerParams(vmem_limit_bytes=_VMEM_LIMIT),
    )(feats, kp["wh1"], kp["bh1"], kp["wh2"], kp["bh2"])
    return out[:, 1:1 + A]


# ----------------------------------------------------------------------------- params
def init_torch_params(key, in_ch, n_actions, feat_size, hidden=512):
    """PyTorch-layout parameters (Conv2d: (OC, IC, KH, KW); Linear: (out, in))."""
    def unif(k, shape, fan_in):
        b = 1.0 / jnp.sqrt(float(fan_in))
        return jax.random.uniform(k, shape, jnp.float32, -b, b)
    ks = jax.random.split(key, 14)
    return dict(
        wc1=unif(ks[0], (32, in_ch, 8, 8), in_ch * 64), bc1=unif(ks[1], (32,), in_ch * 64),
        wc2=unif(ks[2], (64, 32, 4, 4), 32 * 16),       bc2=unif(ks[3], (64,), 32 * 16),
        wc3=unif(ks[4], (64, 64, 3, 3), 64 * 9),        bc3=unif(ks[5], (64,), 64 * 9),
        wv1=unif(ks[6], (hidden, feat_size), feat_size), bv1=unif(ks[7], (hidden,), feat_size),
        wv2=unif(ks[8], (1, hidden), hidden),            bv2=unif(ks[9], (1,), hidden),
        wa1=unif(ks[10], (hidden, feat_size), feat_size), ba1=unif(ks[11], (hidden,), feat_size),
        wa2=unif(ks[12], (n_actions, hidden), hidden),    ba2=unif(ks[13], (n_actions,), hidden),
    )


def prepare_params(tp, feat_shape, n_actions):
    """Convert torch-layout params to the fused / padded / bf16 kernel layout."""
    assert n_actions <= 127, "dueling head layout supports at most 127 actions"
    H3, W3, C3 = feat_shape
    F = H3 * W3 * C3
    hidden = tp["wv1"].shape[0]

    def conv_w(w, scale=1.0):              # (OC, IC, KH, KW) -> (K_pad, 128) bf16
        OC, IC, KH, KW = w.shape
        k = KH * KW * IC
        wf = jnp.transpose(w, (2, 3, 1, 0)).reshape(k, OC) * scale   # rows (kh, kw, ic)
        return jnp.pad(wf, ((0, _round_up(k, 128) - k), (0, 128 - OC))).astype(jnp.bfloat16)

    def conv_b(b):
        return jnp.pad(b.reshape(1, -1), ((0, 0), (0, 128 - b.shape[0]))).astype(jnp.float32)

    def fc_in_perm(w):                     # torch (out, F[c,h,w]) -> (F[h,w,c], out)
        out_dim = w.shape[0]
        return (w.T.reshape(C3, H3, W3, out_dim)
                   .transpose(1, 2, 0, 3).reshape(F, out_dim))

    # fused head layer 1: [Wv1 | Wa1]  (F, 2*hidden)
    wh1 = jnp.concatenate([fc_in_perm(tp["wv1"]), fc_in_perm(tp["wa1"])], axis=1)
    bh1 = jnp.concatenate([tp["bv1"], tp["ba1"]]).reshape(1, 2 * hidden)
    # fused head layer 2: block-diagonal, padded to 128 lanes (lane 0 = V, lanes 1..A = A)
    wh2 = jnp.zeros((2 * hidden, 128), jnp.float32)
    wh2 = wh2.at[:hidden, 0].set(tp["wv2"][0])
    wh2 = wh2.at[hidden:, 1:1 + n_actions].set(tp["wa2"].T)
    bh2 = jnp.zeros((1, 128), jnp.float32)
    bh2 = bh2.at[0, 0].set(tp["bv2"][0])
    bh2 = bh2.at[0, 1:1 + n_actions].set(tp["ba2"])

    return dict(
        # /255 input scale folded into wc1 (review): raw pixels stay exact in bf16.
        wc1=conv_w(tp["wc1"], scale=1.0 / 255.0), bc1=conv_b(tp["bc1"]),
        wc2=conv_w(tp["wc2"]), bc2=conv_b(tp["bc2"]),
        wc3=conv_w(tp["wc3"]), bc3=conv_b(tp["bc3"]),
        wh1=wh1.astype(jnp.bfloat16), bh1=bh1.astype(jnp.float32),
        wh2=wh2.astype(jnp.bfloat16), bh2=bh2,
        n_actions=n_actions,
    )


# ----------------------------------------------------------------------------- references
def reference_forward_f32(x_nchw, tp):
    """Exact f32 mirror of the PyTorch forward (lax.conv, NCHW flatten, global mean)."""
    dn = ("NCHW", "OIHW", "NCHW")
    h = x_nchw / 255.0
    h = lax.conv_general_dilated(h, tp["wc1"], (4, 4), "VALID", dimension_numbers=dn)
    h = jnp.maximum(h + tp["bc1"][None, :, None, None], 0.0)
    h = lax.conv_general_dilated(h, tp["wc2"], (2, 2), "VALID", dimension_numbers=dn)
    h = jnp.maximum(h + tp["bc2"][None, :, None, None], 0.0)
    h = lax.conv_general_dilated(h, tp["wc3"], (1, 1), "VALID", dimension_numbers=dn)
    h = jnp.maximum(h + tp["bc3"][None, :, None, None], 0.0)
    f = h.reshape(h.shape[0], -1)
    v = jnp.maximum(f @ tp["wv1"].T + tp["bv1"], 0.0) @ tp["wv2"].T + tp["bv2"]
    a = jnp.maximum(f @ tp["wa1"].T + tp["ba1"], 0.0) @ tp["wa2"].T + tp["ba2"]
    return v + a - jnp.mean(a)


def reference_forward_bf16(x_nchw, kp):
    """Mirrors the Pallas pipeline numerics (bf16 MXU inputs, f32 accum) in plain JAX."""
    B = x_nchw.shape[0]
    A = kp["n_actions"]
    x = jnp.transpose(x_nchw, (0, 2, 3, 1)).astype(jnp.bfloat16)

    def mm(p, w, b):
        if w.shape[0] != p.shape[1]:
            p = jnp.pad(p, ((0, 0), (0, w.shape[0] - p.shape[1])))
        acc = jnp.dot(p.astype(jnp.bfloat16), w, preferred_element_type=jnp.float32)
        return jnp.maximum(acc + b, 0.0).astype(jnp.bfloat16)

    p, oh, ow = _im2col(x, 8, 4)
    h = mm(p, kp["wc1"], kp["bc1"])[:, :32].reshape(B, oh, ow, 32)
    p, oh, ow = _im2col(h, 4, 2)
    h = mm(p, kp["wc2"], kp["bc2"])[:, :64].reshape(B, oh, ow, 64)
    p, oh, ow = _im2col(h, 3, 1)
    f = mm(p, kp["wc3"], kp["bc3"])[:, :64].reshape(B, oh * ow * 64)

    hh = jnp.maximum(jnp.dot(f.astype(jnp.bfloat16), kp["wh1"],
                             preferred_element_type=jnp.float32) + kp["bh1"], 0.0)
    full = jnp.dot(hh.astype(jnp.bfloat16), kp["wh2"],
                   preferred_element_type=jnp.float32) + kp["bh2"]
    v = full[:, 0:1]
    a = full[:, 1:1 + A]
    return v + a - jnp.mean(a)


# ----------------------------------------------------------------------------- demo
if __name__ == "__main__":
    key = jax.random.PRNGKey(0)
    k_p, k_x = jax.random.split(key)

    # Small Atari-like input: NCHW (batch=2, channels=4, 44x44).  Conv stack spatial
    # sizes: 44 -(8,s4)-> 10 -(4,s2)-> 4 -(3,s1)-> 2, so feature size = 64*2*2 = 256.
    # (16x16 would not survive the stride-4/2 conv stack, hence 44.)
    B, C, H, W, A = 2, 4, 44, 44, 4
    H3, W3, C3 = 2, 2, 64
    feat_size = H3 * W3 * C3

    tp = init_torch_params(k_p, C, A, feat_size)
    kp = prepare_params(tp, (H3, W3, C3), A)
    # Integer raw pixels (exact in bf16, like real uint8 Atari frames).
    x = jax.random.randint(k_x, (B, C, H, W), 0, 256).astype(jnp.float32)

    out = jax.block_until_ready(duel_q_cnn_forward(x, kp))
    assert out.shape == (B, A)

    # Tight check against a reference using the same bf16 quantization as the kernels.
    ref16 = reference_forward_bf16(x, kp)
    assert jnp.allclose(out, ref16, atol=5e-3, rtol=5e-3), "mismatch vs bf16-matched reference"

    # Loose check against the exact f32 PyTorch-style forward (bf16 rounding budget).
    ref32 = reference_forward_f32(x, tp)
    max_err = float(jnp.max(jnp.abs(out - ref32)))
    assert max_err < 0.1, f"too far from f32 reference: {max_err}"

    print("KERNEL_OK")
</pallas_src>

<mosaic_0001>
module attributes {stable_mosaic.version = 11 : i64} {
  func.func @_mm_bias_relu_kernel(%arg0: i32, %arg1: memref<208x256xbf16, #tpu.memory_space<vmem>>, %arg2: memref<256x128xbf16, #tpu.memory_space<vmem>>, %arg3: memref<1x128xf32, #tpu.memory_space<vmem>>, %arg4: memref<208x128xbf16, #tpu.memory_space<vmem>>) attributes {dimension_semantics = [#tpu.dimension_semantics<parallel>], iteration_bounds = array<i64: 1>, scalar_prefetch = 0 : i64, scratch_operands = 0 : i64, tpu.core_type = #tpu.core_type<tc>, window_params = [{transform_indices = @transform_0, window_bounds = array<i64: 208, 256>}, {pipeline_mode = #tpu.pipeline_mode<synchronous>, transform_indices = @transform_1, window_bounds = array<i64: 256, 128>}, {pipeline_mode = #tpu.pipeline_mode<synchronous>, transform_indices = @transform_2, window_bounds = array<i64: 1, 128>}, {transform_indices = @transform_3, window_bounds = array<i64: 208, 128>}]} {
    %c0 = arith.constant 0 : index
    %c0_0 = arith.constant 0 : index
    %0 = vector.load %arg1[%c0, %c0_0] : memref<208x256xbf16, #tpu.memory_space<vmem>>, vector<208x256xbf16>
    %c0_1 = arith.constant 0 : index
    %c0_2 = arith.constant 0 : index
    %1 = vector.load %arg2[%c0_1, %c0_2] : memref<256x128xbf16, #tpu.memory_space<vmem>>, vector<256x128xbf16>
    %cst = arith.constant dense<0.000000e+00> : vector<208x128xf32>
    %2 = tpu.matmul %0, %1, %cst {dimension_numbers = #tpu.dot_dimension_numbers<[1], [0], [0], [1], [0, 0, 1, 1], [], []>} : vector<208x256xbf16>, vector<256x128xbf16>, vector<208x128xf32> -> vector<208x128xf32>
    %c0_3 = arith.constant 0 : index
    %c0_4 = arith.constant 0 : index
    %3 = vector.load %arg3[%c0_3, %c0_4] : memref<1x128xf32, #tpu.memory_space<vmem>>, vector<1x128xf32>
    %4 = vector.broadcast %3 : vector<1x128xf32> to vector<208x128xf32>
    %5 = arith.addf %2, %4 : vector<208x128xf32>
    %cst_5 = arith.constant 0.000000e+00 : f32
    %6 = vector.broadcast %cst_5 : f32 to vector<208x128xf32>
    %7 = arith.maximumf %5, %6 : vector<208x128xf32>
    %8 = arith.truncf %7 : vector<208x128xf32> to vector<208x128xbf16>
    %c0_6 = arith.constant 0 : index
    %c0_7 = arith.constant 0 : index
    %9 = vector.load %arg4[%c0_6, %c0_7] : memref<208x128xbf16, #tpu.memory_space<vmem>>, vector<208x128xbf16>
    tpu.vector_store %arg4[%c0_6, %c0_7], %8 {strides = array<i32>} : memref<208x128xbf16, #tpu.memory_space<vmem>>, vector<208x128xbf16>,
    return
  }
  func.func @transform_0(%arg0: i32) -> (i32, i32) {
    %c0_i32 = arith.constant 0 : i32
    %c0_i32_0 = arith.constant 0 : i32
    return %arg0, %c0_i32 : i32, i32
  }
  func.func @transform_1(%arg0: i32) -> (i32, i32) {
    %c0_i32 = arith.constant 0 : i32
    %c0_i32_0 = arith.constant 0 : i32
    %c0_i32_1 = arith.constant 0 : i32
    return %c0_i32, %c0_i32_0 : i32, i32
  }
  func.func @transform_2(%arg0: i32) -> (i32, i32) {
    %c0_i32 = arith.constant 0 : i32
    %c0_i32_0 = arith.constant 0 : i32
    %c0_i32_1 = arith.constant 0 : i32
    return %c0_i32, %c0_i32_0 : i32, i32
  }
  func.func @transform_3(%arg0: i32) -> (i32, i32) {
    %c0_i32 = arith.constant 0 : i32
    %c0_i32_0 = arith.constant 0 : i32
    return %arg0, %c0_i32 : i32, i32
  }
}

</mosaic_0001>

<bundles_post_ra>
// kernel: tpu_custom_call.1
= control target key start
LH: loop header
LB: loop body
LE: loop exit
PB: predicated region body
PF: predicated region fallthrough
CT: control target
= control target key end

     0   :  { %8 = vsyncpa [#allocation3], 0  ;;  %s1049_s0 = inlined_call_operand.hbm [shape: bf16[208,256], index: 0, kind: input, shape index: {}]   ;;  %s1050_s1 = inlined_call_operand.hbm [shape: bf16[256,128], index: 1, kind: input, shape index: {}]   ;;  %s1051_s2 = inlined_call_operand.vmem [shape: f32[1,128], index: 2, kind: input, shape index: {}]   ;;  %s1052_s3 = inlined_call_operand.hbm [shape: bf16[208,128], index: 3, kind: output, shape index: {}]  }
   0x1   :  { %9 = vsyncpa [#allocation6], 0 }
   0x2   :  { %10 = vsyncpa [#allocation4], 0  ;;  %s15_s14 = sshll.u32 %s1049_s0, 4  ;;  %s970_s15 = smov [#allocation2]   ;;  %s16_s14 = int_to_ptr.hbm [resolvable:$true] %s15_s14 }
   0x3   :  { %s17_s16 = sshll.u32 %s970_s15, 4  ;;  %s28_s19 = sshll.u32 %s1050_s1, 4  ;;  %s18_s16 = int_to_ptr.vmem [resolvable:$true] %s17_s16  ;;  %s29_s19 = int_to_ptr.hbm [resolvable:$true] %s28_s19 }
   0x4   :  { %s971_s20 = smov 128   ;;  %s972_s21 = smov 8  }
   0x5   :  { %23 = dma.hbm_to_vmem [thread:$0]  %s16_s14, 3328, %s18_s16, [#allocation3], %s971_s20, %s971_s20, %s972_s21  }
   0x6   :  { %s973_s22 = smov [#allocation5]   ;;  %s974_s24 = smov 64  }
   0x7   :  { %s30_s23 = sshll.u32 %s973_s22, 4  ;;  %s975_s25 = smov 4   ;;  %s31_s23 = int_to_ptr.vmem [resolvable:$true] %s30_s23 }
   0x8   :  { %36 = dma.hbm_to_vmem [thread:$0]  %s29_s19, 2048, %s31_s23, [#allocation6], %s974_s24, %s974_s24, %s975_s25  }
   0x9   :  { %964 = dma.done.wait [#allocation3], 3328  }
   0xa   :  { %965 = vsyncadd [#allocation3], 4294963968 }
   0xb   :  { %966 = dma.done.wait [#allocation6], 2048  }
   0xc   :  { %967 = vsyncadd [#allocation6], 4294965248  ;;  %v782_v0 = vld [vmem:[#allocation5 + $0x38] sm:$0xff]  ;;  %v781_v2 = vld [vmem:[#allocation5 + $0x30] sm:$0xff]  ;;  %s567_s29 = sshll.u32 %s1052_s3, 4  ;;  %s568_s29 = int_to_ptr.hbm [resolvable:$true] %s567_s29 }
   0xd   :  { %v790_v1 = vld [vmem:[#allocation5 + $0x78] sm:$0xff]  ;;  %335 = vmatpush.bf16.msra.mxu0 %v782_v0  ;;  %868 = vmatpush.bf16.msra.mxu2 %v782_v0  ;;  %v789_v3 = vld [vmem:[#allocation5 + $0x70] sm:$0xff]  ;;  %v780_v4 = vld [vmem:[#allocation5 + $0x28] sm:$0xff] }
   0xe   :  { %409 = vmatpush.bf16.msra.mxu1 %v790_v1  ;;  %876 = vmatpush.bf16.msra.mxu3 %v790_v1  ;;  %v788_v5 = vld [vmem:[#allocation5 + $0x68] sm:$0xff]  ;;  %v779_v6 = vld [vmem:[#allocation5 + $0x20] sm:$0xff]  ;;  %v778_v8 = vld [vmem:[#allocation5 + $0x18] sm:$0xff] }
   0xf   :  { %v787_v7 = vld [vmem:[#allocation5 + $0x60] sm:$0xff]  ;;  %v786_v9 = vld [vmem:[#allocation5 + $0x58] sm:$0xff]  ;;  %v777_v10 = vld [vmem:[#allocation5 + $0x10] sm:$0xff] }
  0x10   :  { %v785_v11 = vld [vmem:[#allocation5 + $0x50] sm:$0xff]  ;;  %v776_v12 = vld [vmem:[#allocation5 + $0x8] sm:$0xff]  ;;  %v775_v14 = vld [vmem:[#allocation5] sm:$0xff] }
  0x11   :  { %336 = vmatpush.bf16.msra.mxu0 %v781_v2  ;;  %869 = vmatpush.bf16.msra.mxu2 %v781_v2  ;;  %v784_v13 = vld [vmem:[#allocation5 + $0x48] sm:$0xff]  ;;  %v783_v15 = vld [vmem:[#allocation5 + $0x40] sm:$0xff]  ;;  %v583_v16 = vld [vmem:[#allocation2] sm:$0xf] }
  0x12   :  { %410 = vmatpush.bf16.msra.mxu1 %v789_v3  ;;  %877 = vmatpush.bf16.msra.mxu3 %v789_v3  ;;  %v750_v17 = vld [vmem:[#allocation2 + $0x4] sm:$0xf0]  ;;  %v631_v18 = vld [vmem:[#allocation2 + $0x60] sm:$0xf]  ;;  %v749_v20 = vld [vmem:[#allocation2 + $0x4] sm:$0xf] }
  0x13   :  { %v762_v19 = vld [vmem:[#allocation2 + $0x64] sm:$0xf0]  ;;  %v585_v21 = vld [vmem:[#allocation2 + $0x8] sm:$0xf0]  ;;  %v763_v22 = vld [vmem:[#allocation2 + $0x74] sm:$0xf]  ;;  %v584_v24 = vor.u32 %v750_v17, %v583_v16 }
  0x14   :  { %v641_v23 = vld [vmem:[#allocation2 + $0x78] sm:$0xf0]  ;;  %v632_v25 = vor.u32 %v762_v19, %v631_v18  ;;  %v588_v26 = vor.u32 %v749_v20, %v585_v21  ;;  %v591_v28 = vld [vmem:[#allocation2 + $0x10] sm:$0xf]  ;;  %v752_v29 = vld [vmem:[#allocation2 + $0x14] sm:$0xf0] }
  0x15   :  { %337 = vmatpush.bf16.msra.mxu0 %v780_v4  ;;  %870 = vmatpush.bf16.msra.mxu2 %v780_v4  ;;  %v644_v27 = vor.u32 %v763_v22, %v641_v23  ;;  %v639_v30 = vld [vmem:[#allocation2 + $0x70] sm:$0xf]  ;;  %v764_v31 = vld [vmem:[#allocation2 + $0x74] sm:$0xf0]  ;;  %v751_v32 = vld [vmem:[#allocation2 + $0x14] sm:$0xf]  ;;  %v592_v36 = vor.u32 %v752_v29, %v591_v28 }
  0x16   :  { %411 = vmatpush.bf16.msra.mxu1 %v788_v5  ;;  %878 = vmatpush.bf16.msra.mxu3 %v788_v5  ;;  %v593_v33 = vld [vmem:[#allocation2 + $0x18] sm:$0xf0]  ;;  %v765_v34 = vld [vmem:[#allocation2 + $0x84] sm:$0xf]  ;;  %v649_v35 = vld [vmem:[#allocation2 + $0x88] sm:$0xf0]  ;;  %v640_v37 = vor.u32 %v764_v31, %v639_v30 }
  0x17   :  { %v596_v38 = vor.u32 %v751_v32, %v593_v33  ;;  %v652_v39 = vor.u32 %v765_v34, %v649_v35  ;;  %v599_v40 = vld [vmem:[#allocation2 + $0x20] sm:$0xf]  ;;  %v754_v41 = vld [vmem:[#allocation2 + $0x24] sm:$0xf0]  ;;  %v753_v44 = vld [vmem:[#allocation2 + $0x24] sm:$0xf] }
  0x18   :  { %v647_v42 = vld [vmem:[#allocation2 + $0x80] sm:$0xf]  ;;  %v766_v43 = vld [vmem:[#allocation2 + $0x84] sm:$0xf0]  ;;  %v601_v45 = vld [vmem:[#allocation2 + $0x28] sm:$0xf0]  ;;  %v600_v48 = vor.u32 %v754_v41, %v599_v40 }
  0x19   :  { %338 = vmatpush.bf16.msra.mxu0 %v779_v6  ;;  %871 = vmatpush.bf16.msra.mxu2 %v779_v6  ;;  %v767_v46 = vld [vmem:[#allocation2 + $0x94] sm:$0xf]  ;;  %v657_v47 = vld [vmem:[#allocation2 + $0x98] sm:$0xf0]  ;;  %v648_v49 = vor.u32 %v766_v43, %v647_v42  ;;  %v604_v50 = vor.u32 %v753_v44, %v601_v45  ;;  %v607_v52 = vld [vmem:[#allocation2 + $0x30] sm:$0xf] }
  0x1a   :  { %412 = vmatpush.bf16.msra.mxu1 %v787_v7  ;;  %879 = vmatpush.bf16.msra.mxu3 %v787_v7  ;;  %v660_v51 = vor.u32 %v767_v46, %v657_v47  ;;  %v756_v53 = vld [vmem:[#allocation2 + $0x34] sm:$0xf0]  ;;  %v655_v54 = vld [vmem:[#allocation2 + $0x90] sm:$0xf]  ;;  %v755_v56 = vld [vmem:[#allocation2 + $0x34] sm:$0xf] }
  0x1b   :  { %v768_v55 = vld [vmem:[#allocation2 + $0x94] sm:$0xf0]  ;;  %v609_v57 = vld [vmem:[#allocation2 + $0x38] sm:$0xf0]  ;;  %v769_v58 = vld [vmem:[#allocation2 + $0xa4] sm:$0xf]  ;;  %v608_v60 = vor.u32 %v756_v53, %v607_v52 }
  0x1c   :  { %v665_v59 = vld [vmem:[#allocation2 + $0xa8] sm:$0xf0]  ;;  %v656_v61 = vor.u32 %v768_v55, %v655_v54  ;;  %v612_v62 = vor.u32 %v755_v56, %v609_v57  ;;  %v615_v0 = vld [vmem:[#allocation2 + $0x40] sm:$0xf]  ;;  %v758_v1 = vld [vmem:[#allocation2 + $0x44] sm:$0xf0] }
  0x1d   :  { %339 = vmatpush.bf16.msra.mxu0 %v778_v8  ;;  %872 = vmatpush.bf16.msra.mxu2 %v778_v8  ;;  %v668_v63 = vor.u32 %v769_v58, %v665_v59  ;;  %v663_v2 = vld [vmem:[#allocation2 + $0xa0] sm:$0xf]  ;;  %v770_v3 = vld [vmem:[#allocation2 + $0xa4] sm:$0xf0]  ;;  %v757_v4 = vld [vmem:[#allocation2 + $0x44] sm:$0xf]  ;;  %v616_v8 = vor.u32 %v758_v1, %v615_v0 }
  0x1e   :  { %413 = vmatpush.bf16.msra.mxu1 %v786_v9  ;;  %880 = vmatpush.bf16.msra.mxu3 %v786_v9  ;;  %v617_v5 = vld [vmem:[#allocation2 + $0x48] sm:$0xf0]  ;;  %v771_v6 = vld [vmem:[#allocation2 + $0xb4] sm:$0xf]  ;;  %v673_v7 = vld [vmem:[#allocation2 + $0xb8] sm:$0xf0]  ;;  %v664_v9 = vor.u32 %v770_v3, %v663_v2 }
  0x1f   :  { %v759_v16 = vld [vmem:[#allocation2 + $0x54] sm:$0xf]  ;;  %v625_v17 = vld [vmem:[#allocation2 + $0x58] sm:$0xf0]  ;;  %v773_v18 = vld [vmem:[#allocation2 + $0xc4] sm:$0xf] }
  0x20   :  { %v681_v19 = vld [vmem:[#allocation2 + $0xc8] sm:$0xf0]  ;;  %v628_v22 = vor.u32 %v759_v16, %v625_v17  ;;  %v1009_v31 = vld [vmem:[%s1051_s2] ss:$0 sm:$0xff]  ;;  %s976_s2 = smov [#allocation7]  }
  0x21   :  { %340 = vmatpush.bf16.msra.mxu0 %v777_v10  ;;  %873 = vmatpush.bf16.msra.mxu2 %v777_v10  ;;  %v620_v10 = vor.u32 %v757_v4, %v617_v5  ;;  %v684_v23 = vor.u32 %v773_v18, %v681_v19  ;;  %s565_s26 = sshll.u32 %s976_s2, 4  ;;  %s566_s26 = int_to_ptr.vmem [resolvable:$true] %s565_s26 }
  0x22   :  { %414 = vmatpush.bf16.msra.mxu1 %v785_v11  ;;  %881 = vmatpush.bf16.msra.mxu3 %v785_v11  ;;  %v676_v11 = vor.u32 %v771_v6, %v673_v7 }
  0x25   :  { %341 = vmatpush.bf16.msra.mxu0 %v776_v12  ;;  %874 = vmatpush.bf16.msra.mxu2 %v776_v12  ;;  %v623_v12 = vld [vmem:[#allocation2 + $0x50] sm:$0xf] }
  0x26   :  { %415 = vmatpush.bf16.msra.mxu1 %v784_v13  ;;  %882 = vmatpush.bf16.msra.mxu3 %v784_v13  ;;  %v760_v13 = vld [vmem:[#allocation2 + $0x54] sm:$0xf0] }
  0x27   :  { %v624_v20 = vor.u32 %v760_v13, %v623_v12 }
  0x29   :  { %342 = vmatpush.bf16.msra.mxu0 %v775_v14  ;;  %875 = vmatpush.bf16.msra.mxu2 %v775_v14  ;;  %v671_v14 = vld [vmem:[#allocation2 + $0xb0] sm:$0xf] }
  0x2a   :  { %416 = vmatpush.bf16.msra.mxu1 %v783_v15  ;;  %883 = vmatpush.bf16.msra.mxu3 %v783_v15  ;;  %v772_v15 = vld [vmem:[#allocation2 + $0xb4] sm:$0xf0] }
  0x2b   :  { %v672_v21 = vor.u32 %v772_v15, %v671_v14 }
  0x2c   :  { %343 = vmatmul.bf16.vlgmr.msra.gmra.mxu0 %v584_v24  ;;  %373 = vmatmul.bf16.vlgmr.msra.gmra.mxu2 %v632_v25  ;;  %v679_v24 = vld [vmem:[#allocation2 + $0xc0] sm:$0xf]  ;;  %v774_v25 = vld [vmem:[#allocation2 + $0xc4] sm:$0xf0] }
  0x2d   :  { %417 = vmatmul.bf16.vlgmr.msra.gmra.mxu1 %v588_v26  ;;  %452 = vmatmul.bf16.vlgmr.msra.gmra.mxu3 %v644_v27  ;;  %v761_v26 = vld [vmem:[#allocation2 + $0x64] sm:$0xf]  ;;  %v633_v27 = vld [vmem:[#allocation2 + $0x68] sm:$0xf0]  ;;  %v680_v28 = vor.u32 %v774_v25, %v679_v24 }
  0x2e   :  { %v636_v29 = vor.u32 %v761_v26, %v633_v27 }
  0x3c   :  { %348 = vmatmul.bf16.gmra.mxu0 %v592_v36  ;;  %378 = vmatmul.bf16.gmra.mxu2 %v640_v37 }
  0x3d   :  { %422 = vmatmul.bf16.gmra.mxu1 %v596_v38  ;;  %457 = vmatmul.bf16.gmra.mxu3 %v652_v39 }
  0x4c   :  { %353 = vmatmul.bf16.gmra.mxu0 %v600_v48  ;;  %383 = vmatmul.bf16.gmra.mxu2 %v648_v49 }
  0x4d   :  { %427 = vmatmul.bf16.gmra.mxu1 %v604_v50  ;;  %462 = vmatmul.bf16.gmra.mxu3 %v660_v51 }
  0x5c   :  { %358 = vmatmul.bf16.gmra.mxu0 %v608_v60  ;;  %388 = vmatmul.bf16.gmra.mxu2 %v656_v61 }
  0x5d   :  { %432 = vmatmul.bf16.gmra.mxu1 %v612_v62  ;;  %467 = vmatmul.bf16.gmra.mxu3 %v668_v63 }
  0x6c   :  { %363 = vmatmul.bf16.gmra.mxu0 %v616_v8  ;;  %393 = vmatmul.bf16.gmra.mxu2 %v664_v9 }
  0x6d   :  { %437 = vmatmul.bf16.gmra.mxu1 %v620_v10  ;;  %472 = vmatmul.bf16.gmra.mxu3 %v676_v11 }
  0x7c   :  { %368 = vmatmul.bf16.gmra.mxu0 %v624_v20  ;;  %398 = vmatmul.bf16.gmra.mxu2 %v672_v21 }
  0x7d   :  { %442 = vmatmul.bf16.gmra.mxu1 %v628_v22  ;;  %477 = vmatmul.bf16.gmra.mxu3 %v684_v23 }
  0x8c   :  { %403 = vmatmul.bf16.gmra.mxu2 %v680_v28 }
  0x8d   :  { %447 = vmatmul.bf16.gmra.mxu1 %v636_v29 }
  0xa9   :  { %v344_v30 = vpop.f32.mrf.mxu0 }
  0xaa   :  { %v418_v32 = vpop.f32.mrf.mxu1  ;;  %v345_v33 = vadd.f32 %v1009_v31, %v344_v30 }
  0xac   :  { %v419_v37 = vadd.f32 %v418_v32, %v345_v33 }
  0xae   :  { %v483_v41 = vmax.f32 %v419_v37, 0.0 }
  0xaf   :  { %v1012_v34 = vpop.f32.mrf.mxu2 }
  0xb0   :  { %v453_v35 = vpop.f32.mrf.mxu3 }
  0xb1   :  { %v346_v36 = vpop.f32.mrf.mxu0 }
  0xb2   :  { %v347_v38 = vadd.f32 %v1009_v31, %v346_v36  ;;  %v420_v39 = vpop.f32.mrf.mxu1 }
  0xb4   :  { %v421_v40 = vadd.f32 %v420_v39, %v347_v38 }
  0xb6   :  { %v484_v42 = vmax.f32 %v421_v40, 0.0 }
  0xb7   :  { %v1015_v43 = vpop.f32.mrf.mxu2 }
  0xb8   :  { %v794_v44 = vpack.c.bf16 %v484_v42, %v483_v41  ;;  %v455_v45 = vpop.f32.mrf.mxu3 }
  0xb9   :  { %v349_v46 = vpop.f32.mrf.mxu0 }
  0xba   :  { %795 = vst [vmem:[#allocation7] sm:$0xff] %v794_v44   ;;  %v423_v47 = vpop.f32.mrf.mxu1  ;;  %v350_v48 = vadd.f32 %v1009_v31, %v349_v46 }
  0xbc   :  { %v424_v52 = vadd.f32 %v423_v47, %v350_v48 }
  0xbe   :  { %v485_v57 = vmax.f32 %v424_v52, 0.0 }
  0xbf   :  { %v379_v49 = vpop.f32.mrf.mxu2 }
  0xc0   :  { %v458_v50 = vpop.f32.mrf.mxu3  ;;  %v380_v55 = vadd.f32 %v1009_v31, %v379_v49 }
  0xc1   :  { %v351_v51 = vpop.f32.mrf.mxu0 }
  0xc2   :  { %v352_v53 = vadd.f32 %v1009_v31, %v351_v51  ;;  %v425_v54 = vpop.f32.mrf.mxu1  ;;  %v454_v60 = vadd.f32 %v453_v35, %v380_v55 }
  0xc4   :  { %v426_v56 = vadd.f32 %v425_v54, %v352_v53  ;;  %v497_v3 = vmax.f32 %v454_v60, 0.0 }
  0xc6   :  { %v486_v58 = vmax.f32 %v426_v56, 0.0 }
  0xc7   :  { %v381_v59 = vpop.f32.mrf.mxu2 }
  0xc8   :  { %v799_v61 = vpack.c.bf16 %v486_v58, %v485_v57  ;;  %v382_v62 = vadd.f32 %v1009_v31, %v381_v59  ;;  %v460_v0 = vpop.f32.mrf.mxu3 }
  0xc9   :  { %v354_v63 = vpop.f32.mrf.mxu0 }
  0xca   :  { %856 = vst [vmem:[#allocation7 + $0x8] sm:$0xff] %v799_v61   ;;  %v456_v1 = vadd.f32 %v455_v45, %v382_v62  ;;  %v428_v2 = vpop.f32.mrf.mxu1  ;;  %v355_v6 = vadd.f32 %v1009_v31, %v354_v63 }
  0xcc   :  { %v498_v4 = vmax.f32 %v456_v1, 0.0  ;;  %v429_v9 = vadd.f32 %v428_v2, %v355_v6 }
  0xce   :  { %v829_v5 = vpack.c.bf16 %v498_v4, %v497_v3  ;;  %v487_v15 = vmax.f32 %v429_v9, 0.0 }
  0xcf   :  { %v384_v7 = vpop.f32.mrf.mxu2 }
  0xd0   :  { %862 = vst [vmem:[#allocation7 + $0x38] sm:$0xff] %v829_v5   ;;  %v463_v12 = vpop.f32.mrf.mxu3  ;;  %v385_v13 = vadd.f32 %v1009_v31, %v384_v7 }
  0xd1   :  { %v356_v8 = vpop.f32.mrf.mxu0 }
  0xd2   :  { %v357_v10 = vadd.f32 %v1009_v31, %v356_v8  ;;  %v430_v11 = vpop.f32.mrf.mxu1  ;;  %v459_v18 = vadd.f32 %v458_v50, %v385_v13 }
  0xd4   :  { %v431_v14 = vadd.f32 %v430_v11, %v357_v10  ;;  %v499_v24 = vmax.f32 %v459_v18, 0.0 }
  0xd6   :  { %v488_v16 = vmax.f32 %v431_v14, 0.0 }
  0xd7   :  { %v386_v17 = vpop.f32.mrf.mxu2 }
  0xd8   :  { %v804_v19 = vpack.c.bf16 %v488_v16, %v487_v15  ;;  %v387_v20 = vadd.f32 %v1009_v31, %v386_v17  ;;  %v465_v26 = vpop.f32.mrf.mxu3 }
  0xd9   :  { %v359_v21 = vpop.f32.mrf.mxu0 }
  0xda   :  { %857 = vst [vmem:[#allocation7 + $0x10] sm:$0xff] %v804_v19   ;;  %v461_v22 = vadd.f32 %v460_v0, %v387_v20  ;;  %v433_v23 = vpop.f32.mrf.mxu1  ;;  %v360_v28 = vadd.f32 %v1009_v31, %v359_v21 }
  0xdc   :  { %v500_v25 = vmax.f32 %v461_v22, 0.0  ;;  %v434_v32 = vadd.f32 %v433_v23, %v360_v28 }
  0xde   :  { %v834_v27 = vpack.c.bf16 %v500_v25, %v499_v24  ;;  %v489_v38 = vmax.f32 %v434_v32, 0.0 }
  0xdf   :  { %v389_v29 = vpop.f32.mrf.mxu2 }
  0xe0   :  { %863 = vst [vmem:[#allocation7 + $0x40] sm:$0xff] %v834_v27   ;;  %v390_v36 = vadd.f32 %v1009_v31, %v389_v29  ;;  %v468_v41 = vpop.f32.mrf.mxu3 }
  0xe1   :  { %v361_v30 = vpop.f32.mrf.mxu0 }
  0xe2   :  { %v362_v33 = vadd.f32 %v1009_v31, %v361_v30  ;;  %v435_v35 = vpop.f32.mrf.mxu1  ;;  %v464_v42 = vadd.f32 %v463_v12, %v390_v36  ;;  %v375_v30 = vadd.f32 %v1009_v31, %v1012_v34 }
  0xe4   :  { %v436_v37 = vadd.f32 %v435_v35, %v362_v33  ;;  %v501_v49 = vmax.f32 %v464_v42, 0.0  ;;  %v377_v35 = vadd.f32 %v1009_v31, %v1015_v43 }
  0xe6   :  { %v490_v39 = vmax.f32 %v436_v37, 0.0 }
  0xe7   :  { %v391_v40 = vpop.f32.mrf.mxu2 }
  0xe8   :  { %v809_v44 = vpack.c.bf16 %v490_v39, %v489_v38  ;;  %v392_v45 = vadd.f32 %v1009_v31, %v391_v40  ;;  %v470_v55 = vpop.f32.mrf.mxu3 }
  0xe9   :  { %v364_v46 = vpop.f32.mrf.mxu0 }
  0xea   :  { %858 = vst [vmem:[#allocation7 + $0x18] sm:$0xff] %v809_v44   ;;  %v466_v47 = vadd.f32 %v465_v26, %v392_v45  ;;  %v438_v48 = vpop.f32.mrf.mxu1  ;;  %v365_v52 = vadd.f32 %v1009_v31, %v364_v46 }
  0xec   :  { %v502_v50 = vmax.f32 %v466_v47, 0.0  ;;  %v439_v56 = vadd.f32 %v438_v48, %v365_v52 }
  0xee   :  { %v839_v51 = vpack.c.bf16 %v502_v50, %v501_v49  ;;  %v491_v61 = vmax.f32 %v439_v56, 0.0 }
  0xef   :  { %v394_v53 = vpop.f32.mrf.mxu2 }
  0xf0   :  { %864 = vst [vmem:[#allocation7 + $0x48] sm:$0xff] %v839_v51   ;;  %v395_v59 = vadd.f32 %v1009_v31, %v394_v53  ;;  %v473_v6 = vpop.f32.mrf.mxu3 }
  0xf1   :  { %v366_v54 = vpop.f32.mrf.mxu0 }
  0xf2   :  { %v367_v57 = vadd.f32 %v1009_v31, %v366_v54  ;;  %v440_v58 = vpop.f32.mrf.mxu1  ;;  %v469_v0 = vadd.f32 %v468_v41, %v395_v59 }
  0xf4   :  { %v441_v60 = vadd.f32 %v440_v58, %v367_v57  ;;  %v503_v7 = vmax.f32 %v469_v0, 0.0 }
  0xf6   :  { %v492_v62 = vmax.f32 %v441_v60, 0.0 }
  0xf7   :  { %v396_v63 = vpop.f32.mrf.mxu2 }
  0xf8   :  { %v814_v1 = vpack.c.bf16 %v492_v62, %v491_v61  ;;  %v397_v2 = vadd.f32 %v1009_v31, %v396_v63  ;;  %v475_v18 = vpop.f32.mrf.mxu3 }
  0xf9   :  { %v369_v3 = vpop.f32.mrf.mxu0 }
  0xfa   :  { %859 = vst [vmem:[#allocation7 + $0x20] sm:$0xff] %v814_v1   ;;  %v471_v4 = vadd.f32 %v470_v55, %v397_v2  ;;  %v443_v5 = vpop.f32.mrf.mxu1  ;;  %v370_v10 = vadd.f32 %v1009_v31, %v369_v3 }
  0xfc   :  { %v504_v8 = vmax.f32 %v471_v4, 0.0  ;;  %v444_v13 = vadd.f32 %v443_v5, %v370_v10 }
  0xfe   :  { %v844_v9 = vpack.c.bf16 %v504_v8, %v503_v7  ;;  %v493_v19 = vmax.f32 %v444_v13, 0.0 }
  0xff   :  { %v399_v11 = vpop.f32.mrf.mxu2 }
 0x100   :  { %865 = vst [vmem:[#allocation7 + $0x50] sm:$0xff] %v844_v9   ;;  %v400_v16 = vadd.f32 %v1009_v31, %v399_v11  ;;  %v478_v32 = vpop.f32.mrf.mxu3 }
 0x101   :  { %v371_v12 = vpop.f32.mrf.mxu0 }
 0x102   :  { %v372_v14 = vadd.f32 %v1009_v31, %v371_v12  ;;  %v445_v15 = vpop.f32.mrf.mxu1  ;;  %v474_v22 = vadd.f32 %v473_v6, %v400_v16 }
 0x104   :  { %v446_v17 = vadd.f32 %v445_v15, %v372_v14  ;;  %v505_v27 = vmax.f32 %v474_v22, 0.0 }
 0x106   :  { %v494_v20 = vmax.f32 %v446_v17, 0.0 }
 0x107   :  { %v401_v21 = vpop.f32.mrf.mxu2 }
 0x108   :  { %v819_v23 = vpack.c.bf16 %v494_v20, %v493_v19  ;;  %v402_v24 = vadd.f32 %v1009_v31, %v401_v21  ;;  %v480_v34 = vpop.f32.mrf.mxu3 }
 0x10a   :  { %860 = vst [vmem:[#allocation7 + $0x28] sm:$0xff] %v819_v23   ;;  %v476_v25 = vadd.f32 %v475_v18, %v402_v24  ;;  %v448_v26 = vpop.f32.mrf.mxu1 }
 0x10b   :  { %v449_v36 = vadd.f32 %v448_v26, %v375_v30 }
 0x10c   :  { %v506_v28 = vmax.f32 %v476_v25, 0.0 }
 0x10d   :  { %v495_v40 = vmax.f32 %v449_v36, 0.0 }
 0x10e   :  { %v849_v29 = vpack.c.bf16 %v506_v28, %v505_v27 }
 0x10f   :  { %v404_v33 = vpop.f32.mrf.mxu2 }
 0x110   :  { %866 = vst [vmem:[#allocation7 + $0x58] sm:$0xff] %v849_v29   ;;  %v405_v39 = vadd.f32 %v1009_v31, %v404_v33 }
 0x112   :  { %v450_v37 = vpop.f32.mrf.mxu1  ;;  %v479_v45 = vadd.f32 %v478_v32, %v405_v39 }
 0x113   :  { %v451_v38 = vadd.f32 %v450_v37, %v377_v35 }
 0x114   :  { %v507_v43 = vmax.f32 %v479_v45, 0.0 }
 0x115   :  { %v496_v41 = vmax.f32 %v451_v38, 0.0 }
 0x117   :  { %v824_v42 = vpack.c.bf16 %v496_v41, %v495_v40  ;;  %v406_v44 = vpop.f32.mrf.mxu2 }
 0x118   :  { %v407_v46 = vadd.f32 %v1009_v31, %v406_v44 }
 0x119   :  { %861 = vst [vmem:[#allocation7 + $0x30] sm:$0xff] %v824_v42  }
 0x11a   :  { %v481_v47 = vadd.f32 %v480_v34, %v407_v46 }
 0x11c   :  { %v508_v48 = vmax.f32 %v481_v47, 0.0 }
 0x11e   :  { %v854_v49 = vpack.c.bf16 %v508_v48, %v507_v43 }
 0x120   :  { %867 = vst [vmem:[#allocation7 + $0x60] sm:$0xff] %v854_v49  }
 0x121   :  { %573 = dma.vmem_to_hbm [thread:$0]  %s566_s26, 1664, %s568_s29, [#allocation4], %s974_s24, %s974_s24, %s975_s25  }
 0x122   :  { %968 = dma.done.wait [#allocation4], 1664  }
 0x123   :  { %969 = vsyncadd [#allocation4], 4294965632 }
 0x124   :  { %578 = vsyncpa [#allocation3], 1 }
 0x125   :  { %579 = vsyncpa [#allocation6], 1 }
 0x126   :  { %580 = vsyncpa [#allocation4], 1 }

</bundles_post_ra>
